<compile_context>
chip_gen: v6e
topology: v6e:2x2x1
jax: 0.10.0
libtpu: 0.0.40
codegen_flags: <defaults>
</compile_context>

<pallas_src>
import functools

import jax
import jax.numpy as jnp
from jax.experimental import pallas as pl
from jax.experimental.pallas import tpu as pltpu

MAX_MU = 1.0
SIGMA_MIN = -5.0
SIGMA_MAX = 2.0

LANE = 128     # lane width (last dim)
SUBLANE = 8    # f32 sublane count (second-to-last dim)


def _round_up(x, m):
    return ((x + m - 1) // m) * m


def _actor_prob_kernel(obs_ref,
                       w1_ref, b1_ref,
                       w2_ref, b2_ref,
                       wh_ref, bh_ref,
                       out_ref, *, ap):
    # ---- backbone: MLP(obs -> hidden -> hidden, ReLU) ----
    # bf16 operands on the MXU, f32 accumulation, f32 epilogue.
    x = obs_ref[...]                                               # bf16 (block_b, Dp)
    h1 = jnp.dot(x, w1_ref[...],
                 preferred_element_type=jnp.float32) + b1_ref[...]
    h1 = jnp.maximum(h1, 0.0).astype(jnp.bfloat16)

    h2 = jnp.dot(h1, w2_ref[...],
                 preferred_element_type=jnp.float32) + b2_ref[...]
    h2 = jnp.maximum(h2, 0.0).astype(jnp.bfloat16)

    # ---- dist head: single fused [mu | sigma] matmul (lane-dense output) ----
    head = jnp.dot(h2, wh_ref[...],
                   preferred_element_type=jnp.float32) + bh_ref[...]
    mu = MAX_MU * jnp.tanh(head[:, :ap])                            # bounded mean
    sigma = jnp.exp(jnp.clip(head[:, ap:], SIGMA_MIN, SIGMA_MAX))   # conditioned sigma

    # packed store: [mu | sigma], both halves 128-lane aligned.
    out_ref[:, :ap] = mu
    out_ref[:, ap:] = sigma


def actor_prob_forward(obs, params, *, block_b=None):
    """Fused ActorProb forward. Returns (mu, sigma) of the Normal distribution."""
    B, obs_dim = obs.shape
    w1, b1, w2, b2, wmu, bmu, wsig, bsig = params
    hidden = w1.shape[1]
    act_dim = wmu.shape[1]

    # Lane-aligned (padded) feature dims.
    dp = _round_up(obs_dim, LANE)
    hp = _round_up(hidden, LANE)
    ap = _round_up(act_dim, LANE)          # per-head padded width; packed head = 2*ap

    # Batch tiling: multiple of the f32 sublane count, capped so the
    # double-buffered tiles stay small (VMEM-safe on v7x's 32 MiB scoped default).
    if block_b is None:
        block_b = min(512, _round_up(B, SUBLANE))
    block_b = max(SUBLANE, _round_up(block_b, SUBLANE))
    bp = _round_up(B, block_b)             # pad batch -> no dropped tail tile
    grid = (bp // block_b,)

    f32, bf16 = jnp.float32, jnp.bfloat16

    # Wrapper-side padding + bf16 cast of matmul operands (biases stay f32).
    obs_p = jnp.zeros((bp, dp), f32).at[:B, :obs_dim].set(obs.astype(f32)).astype(bf16)
    w1_p = jnp.zeros((dp, hp), f32).at[:obs_dim, :hidden].set(w1).astype(bf16)
    b1_p = jnp.zeros((1, hp), f32).at[:, :hidden].set(b1)
    w2_p = jnp.zeros((hp, hp), f32).at[:hidden, :hidden].set(w2).astype(bf16)
    b2_p = jnp.zeros((1, hp), f32).at[:, :hidden].set(b2)
    # Packed head: [mu | sigma], each half padded to `ap` lanes.
    wh_p = (jnp.zeros((hp, 2 * ap), f32)
            .at[:hidden, :act_dim].set(wmu)
            .at[:hidden, ap:ap + act_dim].set(wsig)
            .astype(bf16))
    bh_p = (jnp.zeros((1, 2 * ap), f32)
            .at[:, :act_dim].set(bmu)
            .at[:, ap:ap + act_dim].set(bsig))

    batch_map = lambda i: (i, 0)
    rep_map = lambda i: (0, 0)

    in_specs = [
        pl.BlockSpec((block_b, dp), batch_map),      # obs tile (bf16)
        pl.BlockSpec((dp, hp), rep_map),             # w1 (bf16)
        pl.BlockSpec((1, hp), rep_map),              # b1 (f32)
        pl.BlockSpec((hp, hp), rep_map),             # w2 (bf16)
        pl.BlockSpec((1, hp), rep_map),              # b2 (f32)
        pl.BlockSpec((hp, 2 * ap), rep_map),         # [wmu|wsig] packed (bf16)
        pl.BlockSpec((1, 2 * ap), rep_map),          # [bmu|bsig] packed (f32)
    ]
    out_specs = pl.BlockSpec((block_b, 2 * ap), batch_map)   # packed [mu|sigma], f32
    out_shape = jax.ShapeDtypeStruct((bp, 2 * ap), f32)

    packed = pl.pallas_call(
        functools.partial(_actor_prob_kernel, ap=ap),
        out_shape=out_shape,
        grid_spec=pltpu.PrefetchScalarGridSpec(
            num_scalar_prefetch=0,
            grid=grid,
            in_specs=in_specs,
            out_specs=out_specs,
        ),
        compiler_params=pltpu.CompilerParams(
            dimension_semantics=("parallel",)),   # megacore-shard the batch axis
    )(obs_p, w1_p, b1_p, w2_p, b2_p, wh_p, bh_p)

    mu = packed[:B, :act_dim]
    sigma = packed[:B, ap:ap + act_dim]
    return mu, sigma


def init_params(key, obs_dim, hidden, act_dim):
    """Deterministic PyTorch-Linear-style init; weights stored as (in, out)."""
    def linear(k, fan_in, fan_out):
        kw, kb = jax.random.split(k)
        bound = 1.0 / jnp.sqrt(fan_in)
        w = jax.random.uniform(kw, (fan_in, fan_out), jnp.float32, -bound, bound)
        b = jax.random.uniform(kb, (1, fan_out), jnp.float32, -bound, bound)
        return w, b

    k1, k2, k3, k4 = jax.random.split(key, 4)
    w1, b1 = linear(k1, obs_dim, hidden)
    w2, b2 = linear(k2, hidden, hidden)
    wmu, bmu = linear(k3, hidden, act_dim)
    wsig, bsig = linear(k4, hidden, act_dim)
    return (w1, b1, w2, b2, wmu, bmu, wsig, bsig)


def reference_forward(obs, params):
    """Pure-JAX f32 reference matching the PyTorch semantics."""
    w1, b1, w2, b2, wmu, bmu, wsig, bsig = params
    h = jnp.maximum(obs @ w1 + b1, 0.0)
    h = jnp.maximum(h @ w2 + b2, 0.0)
    mu = MAX_MU * jnp.tanh(h @ wmu + bmu)
    sigma = jnp.exp(jnp.clip(h @ wsig + bsig, SIGMA_MIN, SIGMA_MAX))
    return mu, sigma


if __name__ == "__main__":
    B, OBS_DIM, HIDDEN, ACT_DIM = 8, 16, 32, 8

    key = jax.random.PRNGKey(0)
    k_obs, k_params = jax.random.split(key)

    obs = jax.random.normal(k_obs, (B, OBS_DIM), jnp.float32)
    params = init_params(k_params, OBS_DIM, HIDDEN, ACT_DIM)

    mu, sigma = actor_prob_forward(obs, params)
    mu = jax.block_until_ready(mu)
    sigma = jax.block_until_ready(sigma)

    mu_ref, sigma_ref = reference_forward(obs, params)
    # bf16 matmul operands (f32 accumulation) -> compare to f32 reference with
    # a tolerance that covers bf16 input rounding (~0.4% relative per operand).
    assert jnp.allclose(mu, mu_ref, atol=5e-2, rtol=5e-2)
    assert jnp.allclose(sigma, sigma_ref, atol=5e-2, rtol=5e-2)
    assert mu.shape == (B, ACT_DIM) and sigma.shape == (B, ACT_DIM)
    assert bool(jnp.all(sigma > 0.0))

    # TODO(synk): torch.distributions.Normal is a host-side wrapper; the kernel
    # returns its (mu, sigma) parameters, which fully determine the distribution.
    print("KERNEL_OK")
</pallas_src>

<mosaic_0001>
module attributes {stable_mosaic.version = 11 : i64} {
  func.func @_actor_prob_kernel(%arg0: i32, %arg1: memref<8x128xbf16, #tpu.memory_space<vmem>>, %arg2: memref<128x128xbf16, #tpu.memory_space<vmem>>, %arg3: memref<1x128xf32, #tpu.memory_space<vmem>>, %arg4: memref<128x128xbf16, #tpu.memory_space<vmem>>, %arg5: memref<1x128xf32, #tpu.memory_space<vmem>>, %arg6: memref<128x256xbf16, #tpu.memory_space<vmem>>, %arg7: memref<1x256xf32, #tpu.memory_space<vmem>>, %arg8: memref<8x256xf32, #tpu.memory_space<vmem>>) attributes {dimension_semantics = [#tpu.dimension_semantics<parallel>], iteration_bounds = array<i64: 1>, scalar_prefetch = 0 : i64, scratch_operands = 0 : i64, tpu.core_type = #tpu.core_type<tc>, window_params = [{transform_indices = @transform_0, window_bounds = array<i64: 8, 128>}, {pipeline_mode = #tpu.pipeline_mode<synchronous>, transform_indices = @transform_1, window_bounds = array<i64: 128, 128>}, {pipeline_mode = #tpu.pipeline_mode<synchronous>, transform_indices = @transform_2, window_bounds = array<i64: 1, 128>}, {pipeline_mode = #tpu.pipeline_mode<synchronous>, transform_indices = @transform_3, window_bounds = array<i64: 128, 128>}, {pipeline_mode = #tpu.pipeline_mode<synchronous>, transform_indices = @transform_4, window_bounds = array<i64: 1, 128>}, {pipeline_mode = #tpu.pipeline_mode<synchronous>, transform_indices = @transform_5, window_bounds = array<i64: 128, 256>}, {pipeline_mode = #tpu.pipeline_mode<synchronous>, transform_indices = @transform_6, window_bounds = array<i64: 1, 256>}, {transform_indices = @transform_7, window_bounds = array<i64: 8, 256>}]} {
    %c0 = arith.constant 0 : index
    %c0_0 = arith.constant 0 : index
    %0 = vector.load %arg1[%c0, %c0_0] : memref<8x128xbf16, #tpu.memory_space<vmem>>, vector<8x128xbf16>
    %c0_1 = arith.constant 0 : index
    %c0_2 = arith.constant 0 : index
    %1 = vector.load %arg2[%c0_1, %c0_2] : memref<128x128xbf16, #tpu.memory_space<vmem>>, vector<128x128xbf16>
    %cst = arith.constant dense<0.000000e+00> : vector<8x128xf32>
    %2 = tpu.matmul %0, %1, %cst {dimension_numbers = #tpu.dot_dimension_numbers<[1], [0], [0], [1], [0, 0, 1, 1], [], []>} : vector<8x128xbf16>, vector<128x128xbf16>, vector<8x128xf32> -> vector<8x128xf32>
    %c0_3 = arith.constant 0 : index
    %c0_4 = arith.constant 0 : index
    %3 = vector.load %arg3[%c0_3, %c0_4] : memref<1x128xf32, #tpu.memory_space<vmem>>, vector<1x128xf32>
    %4 = vector.broadcast %3 : vector<1x128xf32> to vector<8x128xf32>
    %5 = arith.addf %2, %4 : vector<8x128xf32>
    %cst_5 = arith.constant 0.000000e+00 : f32
    %6 = vector.broadcast %cst_5 : f32 to vector<8x128xf32>
    %7 = arith.maximumf %5, %6 : vector<8x128xf32>
    %8 = arith.truncf %7 : vector<8x128xf32> to vector<8x128xbf16>
    %c0_6 = arith.constant 0 : index
    %c0_7 = arith.constant 0 : index
    %9 = vector.load %arg4[%c0_6, %c0_7] : memref<128x128xbf16, #tpu.memory_space<vmem>>, vector<128x128xbf16>
    %cst_8 = arith.constant dense<0.000000e+00> : vector<8x128xf32>
    %10 = tpu.matmul %8, %9, %cst_8 {dimension_numbers = #tpu.dot_dimension_numbers<[1], [0], [0], [1], [0, 0, 1, 1], [], []>} : vector<8x128xbf16>, vector<128x128xbf16>, vector<8x128xf32> -> vector<8x128xf32>
    %c0_9 = arith.constant 0 : index
    %c0_10 = arith.constant 0 : index
    %11 = vector.load %arg5[%c0_9, %c0_10] : memref<1x128xf32, #tpu.memory_space<vmem>>, vector<1x128xf32>
    %12 = vector.broadcast %11 : vector<1x128xf32> to vector<8x128xf32>
    %13 = arith.addf %10, %12 : vector<8x128xf32>
    %cst_11 = arith.constant 0.000000e+00 : f32
    %14 = vector.broadcast %cst_11 : f32 to vector<8x128xf32>
    %15 = arith.maximumf %13, %14 : vector<8x128xf32>
    %16 = arith.truncf %15 : vector<8x128xf32> to vector<8x128xbf16>
    %c0_12 = arith.constant 0 : index
    %c0_13 = arith.constant 0 : index
    %17 = vector.load %arg6[%c0_12, %c0_13] : memref<128x256xbf16, #tpu.memory_space<vmem>>, vector<128x256xbf16>
    %cst_14 = arith.constant dense<0.000000e+00> : vector<8x256xf32>
    %18 = tpu.matmul %16, %17, %cst_14 {dimension_numbers = #tpu.dot_dimension_numbers<[1], [0], [0], [1], [0, 0, 1, 1], [], []>} : vector<8x128xbf16>, vector<128x256xbf16>, vector<8x256xf32> -> vector<8x256xf32>
    %c0_15 = arith.constant 0 : index
    %c0_16 = arith.constant 0 : index
    %19 = vector.load %arg7[%c0_15, %c0_16] : memref<1x256xf32, #tpu.memory_space<vmem>>, vector<1x256xf32>
    %20 = vector.broadcast %19 : vector<1x256xf32> to vector<8x256xf32>
    %21 = arith.addf %18, %20 : vector<8x256xf32>
    %22 = vector.extract_strided_slice %21 {offsets = [0, 0], sizes = [8, 128], strides = [1, 1]} : vector<8x256xf32> to vector<8x128xf32>
    %23 = math.tanh %22 : vector<8x128xf32>
    %cst_17 = arith.constant 1.000000e+00 : f32
    %24 = vector.broadcast %cst_17 : f32 to vector<8x128xf32>
    %25 = arith.mulf %24, %23 : vector<8x128xf32>
    %26 = vector.extract_strided_slice %21 {offsets = [0, 128], sizes = [8, 128], strides = [1, 1]} : vector<8x256xf32> to vector<8x128xf32>
    %cst_18 = arith.constant -5.000000e+00 : f32
    %cst_19 = arith.constant 2.000000e+00 : f32
    %27 = vector.broadcast %cst_18 : f32 to vector<8x128xf32>
    %28 = arith.maximumf %27, %26 : vector<8x128xf32>
    %29 = vector.broadcast %cst_19 : f32 to vector<8x128xf32>
    %30 = arith.minimumf %29, %28 : vector<8x128xf32>
    %31 = math.exp %30 : vector<8x128xf32>
    %c0_20 = arith.constant 0 : index
    %c0_21 = arith.constant 0 : index
    %32 = vector.load %arg8[%c0_20, %c0_21] : memref<8x256xf32, #tpu.memory_space<vmem>>, vector<8x128xf32>
    tpu.vector_store %arg8[%c0_20, %c0_21], %25 {strides = array<i32>} : memref<8x256xf32, #tpu.memory_space<vmem>>, vector<8x128xf32>,
    %c0_22 = arith.constant 0 : index
    %c128 = arith.constant 128 : index
    %33 = vector.load %arg8[%c0_22, %c128] : memref<8x256xf32, #tpu.memory_space<vmem>>, vector<8x128xf32>
    tpu.vector_store %arg8[%c0_22, %c128], %31 {strides = array<i32>} : memref<8x256xf32, #tpu.memory_space<vmem>>, vector<8x128xf32>,
    return
  }
  func.func @transform_0(%arg0: i32) -> (i32, i32) {
    %c0_i32 = arith.constant 0 : i32
    %c0_i32_0 = arith.constant 0 : i32
    return %arg0, %c0_i32 : i32, i32
  }
  func.func @transform_1(%arg0: i32) -> (i32, i32) {
    %c0_i32 = arith.constant 0 : i32
    %c0_i32_0 = arith.constant 0 : i32
    %c0_i32_1 = arith.constant 0 : i32
    return %c0_i32, %c0_i32_0 : i32, i32
  }
  func.func @transform_2(%arg0: i32) -> (i32, i32) {
    %c0_i32 = arith.constant 0 : i32
    %c0_i32_0 = arith.constant 0 : i32
    %c0_i32_1 = arith.constant 0 : i32
    return %c0_i32, %c0_i32_0 : i32, i32
  }
  func.func @transform_3(%arg0: i32) -> (i32, i32) {
    %c0_i32 = arith.constant 0 : i32
    %c0_i32_0 = arith.constant 0 : i32
    %c0_i32_1 = arith.constant 0 : i32
    return %c0_i32, %c0_i32_0 : i32, i32
  }
  func.func @transform_4(%arg0: i32) -> (i32, i32) {
    %c0_i32 = arith.constant 0 : i32
    %c0_i32_0 = arith.constant 0 : i32
    %c0_i32_1 = arith.constant 0 : i32
    return %c0_i32, %c0_i32_0 : i32, i32
  }
  func.func @transform_5(%arg0: i32) -> (i32, i32) {
    %c0_i32 = arith.constant 0 : i32
    %c0_i32_0 = arith.constant 0 : i32
    %c0_i32_1 = arith.constant 0 : i32
    return %c0_i32, %c0_i32_0 : i32, i32
  }
  func.func @transform_6(%arg0: i32) -> (i32, i32) {
    %c0_i32 = arith.constant 0 : i32
    %c0_i32_0 = arith.constant 0 : i32
    %c0_i32_1 = arith.constant 0 : i32
    return %c0_i32, %c0_i32_0 : i32, i32
  }
  func.func @transform_7(%arg0: i32) -> (i32, i32) {
    %c0_i32 = arith.constant 0 : i32
    %c0_i32_0 = arith.constant 0 : i32
    return %arg0, %c0_i32 : i32, i32
  }
}

</mosaic_0001>

<bundles_post_ra>
// kernel: tpu_custom_call.1
= control target key start
LH: loop header
LB: loop body
LE: loop exit
PB: predicated region body
PF: predicated region fallthrough
CT: control target
= control target key end

     0   :  { %12 = vsyncpa [#allocation3], 0  ;;  %s813_s0 = inlined_call_operand.hbm [shape: bf16[8,128], index: 0, kind: input, shape index: {}]   ;;  %s814_s1 = inlined_call_operand.hbm [shape: bf16[128,128], index: 1, kind: input, shape index: {}]   ;;  %s815_s2 = inlined_call_operand.vmem [shape: f32[1,128], index: 2, kind: input, shape index: {}]   ;;  %s816_s3 = inlined_call_operand.hbm [shape: bf16[128,128], index: 3, kind: input, shape index: {}]   ;;  %s817_s4 = inlined_call_operand.vmem [shape: f32[1,128], index: 4, kind: input, shape index: {}]   ;;  %s818_s5 = inlined_call_operand.hbm [shape: bf16[128,256], index: 5, kind: input, shape index: {}]   ;;  %s819_s6 = inlined_call_operand.vmem [shape: f32[1,256], index: 6, kind: input, shape index: {}]   ;;  %s820_s7 = inlined_call_operand.hbm [shape: f32[8,256], index: 7, kind: output, shape index: {}]  }
   0x1   :  { %13 = vsyncpa [#allocation6], 0 }
   0x2   :  { %14 = vsyncpa [#allocation9], 0 }
   0x3   :  { %15 = vsyncpa [#allocation4], 0  ;;  %s737_s24 = smov [#allocation5]  }
   0x4   :  { %s31_s25 = sshll.u32 %s737_s24, 4  ;;  %s32_s25 = int_to_ptr.vmem [resolvable:$true] %s31_s25 }
   0x5   :  { %s637_s26 = scalar_lea.vmem %s32_s25, 1024  ;;  %p642_p1 = scmp.lt.s32.totalorder %s32_s25, %s32_s25 }
   0x6   :  { %p638_p0 = scmp.ne.s32.totalorder %s32_s25, %s637_s26  ;;  %p643_p2 = scmp.lt.s32.totalorder %s637_s26, %s637_s26 }
   0x8   :  { %p644_p3 = por %p643_p2, %p642_p1 }
   0xa   :  { %p645_p4 = pnand %p644_p3, %p638_p0 }
   0xc   :  { %648 = shalt.err (!%p645_p4)
}
   0xd   :  { %s738_s27 = smov 64   ;;  %s739_s28 = smov 4  }
   0xe   :  { %37 = dma.hbm_to_vmem [thread:$0]  %s814_s1, 1024, %s32_s25, [#allocation6], %s738_s27, %s738_s27, %s739_s28  }
   0xf   :  { %s740_s8 = smov [#allocation2]   ;;  %s741_s10 = smov [#allocation7]  }
  0x10   :  { %s22_s9 = sshll.u32 %s740_s8, 4  ;;  %s45_s11 = sshll.u32 %s741_s10, 4  ;;  %s23_s9 = int_to_ptr.vmem [resolvable:$true] %s22_s9  ;;  %s46_s11 = int_to_ptr.vmem [resolvable:$true] %s45_s11 }
  0x11   :  { %s657_s12 = scalar_lea.vmem %s23_s9, 64  ;;  %p662_p6 = scmp.lt.s32.totalorder %s23_s9, %s23_s9 }
  0x12   :  { %p658_p5 = scmp.ne.s32.totalorder %s23_s9, %s657_s12  ;;  %p663_p7 = scmp.lt.s32.totalorder %s657_s12, %s657_s12 }
  0x14   :  { %p664_p8 = por %p663_p7, %p662_p6 }
  0x16   :  { %p665_p9 = pnand %p664_p8, %p658_p5 }
  0x18   :  { %668 = shalt.err (!%p665_p9)
}
  0x19   :  { %25 = dma.hbm_to_vmem [thread:$0]  %s813_s0, 64, %s23_s9, [#allocation3]  }
  0x1a   :  { %s677_s15 = scalar_lea.vmem %s46_s11, 1024  ;;  %p682_p11 = scmp.lt.s32.totalorder %s46_s11, %s46_s11 }
  0x1b   :  { %p678_p10 = scmp.ne.s32.totalorder %s46_s11, %s677_s15  ;;  %p683_p12 = scmp.lt.s32.totalorder %s677_s15, %s677_s15 }
  0x1d   :  { %p684_p13 = por %p683_p12, %p682_p11 }
  0x1f   :  { %p685_p0 = pnand %p684_p13, %p678_p10 }
  0x21   :  { %688 = shalt.err (!%p685_p0)
}
  0x22   :  { %51 = dma.hbm_to_vmem [thread:$0]  %s816_s3, 1024, %s46_s11, [#allocation6], %s738_s27, %s738_s27, %s739_s28  }
  0x23   :  { %s742_s17 = smov [#allocation8]  }
  0x24   :  { %s59_s18 = sshll.u32 %s742_s17, 4  ;;  %s60_s18 = int_to_ptr.vmem [resolvable:$true] %s59_s18 }
  0x25   :  { %s697_s19 = scalar_lea.vmem %s60_s18, 2048  ;;  %p702_p2 = scmp.lt.s32.totalorder %s60_s18, %s60_s18 }
  0x26   :  { %p698_p1 = scmp.ne.s32.totalorder %s60_s18, %s697_s19  ;;  %p703_p3 = scmp.lt.s32.totalorder %s697_s19, %s697_s19 }
  0x28   :  { %p704_p4 = por %p703_p3, %p702_p2 }
  0x2a   :  { %p705_p5 = pnand %p704_p4, %p698_p1 }
  0x2c   :  { %708 = shalt.err (!%p705_p5)
}
  0x2d   :  { %s743_s0 = smov 128   ;;  %s744_s20 = smov 8  }
  0x2e   :  { %65 = dma.hbm_to_vmem [thread:$0]  %s818_s5, 2048, %s60_s18, [#allocation9], %s743_s0, %s743_s0, %s744_s20  }
  0x2f   :  { %729 = dma.done.wait [#allocation3], 64  }
  0x30   :  { %730 = vsyncadd [#allocation3], 4294967232 }
  0x31   :  { %731 = dma.done.wait [#allocation6], 2048  }
  0x32   :  { %732 = vsyncadd [#allocation6], 4294965248 }
  0x33   :  { %733 = dma.done.wait [#allocation9], 2048  }
  0x34   :  { %734 = vsyncadd [#allocation9], 4294965248  ;;  %v745_v0 = vmov 0.0   ;;  %vm746_vm0 = vmmov 0   ;;  %v585_v1 = vld [vmem:[#allocation5 + $0x38] sm:$0xff]   ;;  %v586_v2 = vld [vmem:[#allocation5 + $0x30] sm:$0xff]   ;;  %v326_v51 = vlaneseq }
  0x35   :  { %533 = vmatprep.subr.bf16.mxu0 %v745_v0  ;;  %549 = vmatprep.mubr.msk.bf16.mxu0 %vm746_vm0, %v745_v0  ;;  %v587_v3 = vld [vmem:[#allocation5 + $0x28] sm:$0xff]   ;;  %v593_v4 = vld [vmem:[#allocation7 + $0x38] sm:$0xff]   ;;  %v588_v5 = vld [vmem:[#allocation5 + $0x20] sm:$0xff]   ;;  %v747_v42 = vmov 0  }
  0x36   :  { %553 = vmatprep.subr.bf16.mxu1 %v745_v0  ;;  %569 = vmatprep.mubr.msk.bf16.mxu1 %vm746_vm0, %v745_v0  ;;  %v594_v6 = vld [vmem:[#allocation7 + $0x30] sm:$0xff]   ;;  %v589_v7 = vld [vmem:[#allocation5 + $0x18] sm:$0xff]   ;;  %v595_v8 = vld [vmem:[#allocation7 + $0x28] sm:$0xff]   ;;  %v327_v52 = vshrl.u32 %v326_v51, 7 }
  0x37   :  { %534 = vmatpush3.bf16.msra.mxu0 %v585_v1  ;;  %554 = vmatpush3.bf16.msra.mxu1 %v593_v4  ;;  %v590_v9 = vld [vmem:[#allocation5 + $0x10] sm:$0xff]   ;;  %v596_v10 = vld [vmem:[#allocation7 + $0x20] sm:$0xff]   ;;  %v591_v11 = vld [vmem:[#allocation5 + $0x8] sm:$0xff]  }
  0x38   :  { %535 = vmatprep.subr.bf16.mxu0 %v745_v0  ;;  %555 = vmatprep.subr.bf16.mxu1 %v745_v0  ;;  %v597_v12 = vld [vmem:[#allocation7 + $0x18] sm:$0xff]   ;;  %v592_v13 = vld [vmem:[#allocation5] sm:$0xff]   ;;  %v598_v14 = vld [vmem:[#allocation7 + $0x10] sm:$0xff]   ;;  %v328_v53 = vsub.s32 0, %v327_v52  ;;  %v332_v55 = vsub.s32 1, %v327_v52 }
  0x39   :  { %v81_v15 = vld [vmem:[#allocation2] sm:$0xf]  ;;  %v599_v16 = vld [vmem:[#allocation7 + $0x8] sm:$0xff]   ;;  %v600_v17 = vld [vmem:[#allocation7] sm:$0xff]  }
  0x3a   :  { %v601_v18 = vld [vmem:[#allocation8 + $0x70] ss:$8 sps:$4 sm:$0xff]   ;;  %v603_v19 = vld [vmem:[#allocation8 + $0x74] ss:$8 sps:$4 sm:$0xff]   ;;  %v606_v20 = vld [vmem:[#allocation8 + $0x64] ss:$8 sps:$4 sm:$0xff]  }
  0x3b   :  { %536 = vmatpush3.bf16.msra.mxu0 %v586_v2  ;;  %556 = vmatpush3.bf16.msra.mxu1 %v594_v6  ;;  %v604_v21 = vld [vmem:[#allocation8 + $0x60] ss:$8 sps:$4 sm:$0xff]   ;;  %v609_v22 = vld [vmem:[#allocation8 + $0x54] ss:$8 sps:$4 sm:$0xff]   ;;  %v607_v23 = vld [vmem:[#allocation8 + $0x50] ss:$8 sps:$4 sm:$0xff]  }
  0x3c   :  { %537 = vmatprep.subr.bf16.mxu0 %v745_v0  ;;  %557 = vmatprep.subr.bf16.mxu1 %v745_v0  ;;  %v612_v24 = vld [vmem:[#allocation8 + $0x44] ss:$8 sps:$4 sm:$0xff]   ;;  %v610_v25 = vld [vmem:[#allocation8 + $0x40] ss:$8 sps:$4 sm:$0xff]   ;;  %v615_v26 = vld [vmem:[#allocation8 + $0x34] ss:$8 sps:$4 sm:$0xff]  }
  0x3d   :  { %v613_v27 = vld [vmem:[#allocation8 + $0x30] ss:$8 sps:$4 sm:$0xff]   ;;  %v618_v28 = vld [vmem:[#allocation8 + $0x24] ss:$8 sps:$4 sm:$0xff]   ;;  %v616_v29 = vld [vmem:[#allocation8 + $0x20] ss:$8 sps:$4 sm:$0xff]  }
  0x3e   :  { %v621_v30 = vld [vmem:[#allocation8 + $0x14] ss:$8 sps:$4 sm:$0xff]   ;;  %v619_v31 = vld [vmem:[#allocation8 + $0x10] ss:$8 sps:$4 sm:$0xff]   ;;  %v624_v40 = vld [vmem:[#allocation8 + $0x4] ss:$8 sps:$4 sm:$0xff]  }
  0x3f   :  { %538 = vmatpush3.bf16.msra.mxu0 %v587_v3  ;;  %558 = vmatpush3.bf16.msra.mxu1 %v595_v8  ;;  %v481_v32 = vld [vmem:[%s815_s2] ss:$0 sm:$0xff]  ;;  %v622_v41 = vld [vmem:[#allocation8] ss:$8 sps:$4 sm:$0xff]  }
  0x40   :  { %539 = vmatprep.subr.bf16.mxu0 %v745_v0  ;;  %559 = vmatprep.subr.bf16.mxu1 %v745_v0  ;;  %v490_v43 = vld [vmem:[%s817_s4] ss:$0 sm:$0xff]  ;;  %s748_s4 = smov [#allocation10]  }
  0x41   :  { %v324_v54 = vld [vmem:[%s819_s6] sm:$0x3]  ;;  %s470_s26 = sshll.u32 %s748_s4, 4  ;;  %s471_s26 = int_to_ptr.vmem [resolvable:$true] %s470_s26 }
  0x42   :  { %v329_v56 = vrot.slane %v324_v54, %v328_v53  ;;  %v333_v57 = vrot.slane %v324_v54, %v332_v55  ;;  %s709_s6 = scalar_lea.vmem %s471_s26, 256  ;;  %p714_p7 = scmp.lt.s32.totalorder %s471_s26, %s471_s26 }
  0x43   :  { %540 = vmatpush3.bf16.msra.mxu0 %v588_v5  ;;  %560 = vmatpush3.bf16.msra.mxu1 %v596_v10  ;;  %p710_p6 = scmp.ne.s32.totalorder %s471_s26, %s709_s6  ;;  %p715_p8 = scmp.lt.s32.totalorder %s709_s6, %s709_s6 }
  0x44   :  { %541 = vmatprep.subr.bf16.mxu0 %v745_v0  ;;  %561 = vmatprep.subr.bf16.mxu1 %v745_v0 }
  0x45   :  { %p716_p9 = por %p715_p8, %p714_p7 }
  0x47   :  { %542 = vmatpush3.bf16.msra.mxu0 %v589_v7  ;;  %562 = vmatpush3.bf16.msra.mxu1 %v597_v12  ;;  %p717_p10 = pnand %p716_p9, %p710_p6 }
  0x48   :  { %543 = vmatprep.subr.bf16.mxu0 %v745_v0  ;;  %563 = vmatprep.subr.bf16.mxu1 %v745_v0 }
  0x4b   :  { %544 = vmatpush3.bf16.msra.mxu0 %v590_v9  ;;  %564 = vmatpush3.bf16.msra.mxu1 %v598_v14 }
  0x4c   :  { %545 = vmatprep.subr.bf16.mxu0 %v745_v0  ;;  %565 = vmatprep.subr.bf16.mxu1 %v745_v0 }
  0x4f   :  { %546 = vmatpush3.bf16.msra.mxu0 %v591_v11  ;;  %566 = vmatpush3.bf16.msra.mxu1 %v599_v16 }
  0x50   :  { %547 = vmatprep.subr.bf16.mxu0 %v745_v0  ;;  %567 = vmatprep.subr.bf16.mxu1 %v745_v0 }
  0x53   :  { %548 = vmatpush3.bf16.msra.mxu0 %v592_v13  ;;  %568 = vmatpush3.bf16.msra.mxu1 %v600_v17 }
  0x54   :  { %416 = vmatprep.subr.bf16.mxu0 %v603_v19 }
  0x56   :  { %550 = vmatmul.mubr.bf16.vlgmr.msra.gmra.mxu0 %v81_v15 }
  0x57   :  { %417 = vmatpush1.bf16.msra.mxu0 %v601_v18  ;;  %448 = vmatprep.mubr.bf16.mxu0 %v747_v42 }
  0x58   :  { %418 = vmatprep.subr.bf16.mxu0 %v606_v20 }
  0x5b   :  { %419 = vmatpush1.bf16.msra.mxu0 %v604_v21 }
  0x5c   :  { %420 = vmatprep.subr.bf16.mxu0 %v609_v22 }
  0x5f   :  { %421 = vmatpush1.bf16.msra.mxu0 %v607_v23 }
  0x60   :  { %422 = vmatprep.subr.bf16.mxu0 %v612_v24 }
  0x63   :  { %423 = vmatpush1.bf16.msra.mxu0 %v610_v25 }
  0x64   :  { %424 = vmatprep.subr.bf16.mxu0 %v615_v26 }
  0x67   :  { %425 = vmatpush1.bf16.msra.mxu0 %v613_v27 }
  0x68   :  { %426 = vmatprep.subr.bf16.mxu0 %v618_v28 }
  0x6b   :  { %427 = vmatpush1.bf16.msra.mxu0 %v616_v29 }
  0x6c   :  { %428 = vmatprep.subr.bf16.mxu0 %v621_v30 }
  0x6f   :  { %429 = vmatpush1.bf16.msra.mxu0 %v619_v31 }
  0x70   :  { %430 = vmatprep.subr.bf16.mxu0 %v624_v40 }
  0x73   :  { %431 = vmatpush1.bf16.msra.mxu0 %v622_v41 }
 0x116   :  { %v187_v33 = vpop.f32.mrf.mxu0 }
 0x117   :  { %v188_v34 = vadd.f32 %v481_v32, %v187_v33 }
 0x118   :  { %v551_v35 = vpop.f32.mrf.mxu0 }
 0x119   :  { %v193_v36 = vmax.f32 %v188_v34, 0.0 }
 0x11a   :  { %v190_v37 = vpop.f32.mrf.mxu0 }
 0x11b   :  { %v194_v38 = vpack.c.bf16 %v193_v36, %v193_v36 }
 0x11c   :  { %v552_v39 = vpop.f32.mrf.mxu0 }
 0x11d   :  { %570 = vmatmul.mubr.bf16.vlgmr.msra.gmra.mxu1 %v194_v38 }
 0x1dd   :  { %v300_v44 = vpop.f32.mrf.mxu1 }
 0x1de   :  { %v301_v45 = vadd.f32 %v490_v43, %v300_v44 }
 0x1df   :  { %v571_v46 = vpop.f32.mrf.mxu1 }
 0x1e0   :  { %v306_v47 = vmax.f32 %v301_v45, 0.0 }
 0x1e1   :  { %v303_v48 = vpop.f32.mrf.mxu1 }
 0x1e2   :  { %v307_v49 = vpack.c.bf16 %v306_v47, %v306_v47 }
 0x1e3   :  { %v572_v50 = vpop.f32.mrf.mxu1 }
 0x1e4   :  { %449 = vmatmul.mubr.bf16.vlgmr.msra.gmra.mxu0 %v307_v49 }
 0x2a4   :  { %v450_v58 = vpop.f32.mrf.mxu0 }
 0x2a5   :  { %v451_v59 = vadd.f32 %v450_v58, %v329_v56 }
 0x2a6   :  { %v452_v60 = vpop.f32.mrf.mxu0 }
 0x2a7   :  { %625 = vtanh.f32 %v451_v59  ;;  %v453_v61 = vadd.f32 %v452_v60, %v333_v57 }
 0x2a8   :  { %v454_v62 = vpop.f32.mrf.mxu0 }
 0x2a9   :  { %v458_v63 = vmax.f32 %v453_v61, -5.0 }
 0x2aa   :  { %v455_v0 = vpop.f32.mrf.mxu0 }
 0x2ab   :  { %v459_v1 = vmin.f32 %v458_v63, 2.0 }
 0x2ad   :  { %v460_v2 = vmul.f32 1.442695, %v459_v1 }
 0x2af   :  { %627 = vpow2.f32 %v460_v2 }
 0x2b4   :  { %v626_v3 = vpop.eup %625 }
 0x2b5   :  { %462 = vst [vmem:[#allocation10] sm:$0xff] %v626_v3 }
 0x2bc   :  { %v628_v4 = vpop.eup %627 }
 0x2bd   :  { %463 = vst [vmem:[#allocation10 + $0x8] sm:$0xff] %v628_v4 }
 0x2be   :  { %720 = shalt.err (!%p717_p10)
}
 0x2bf   :  { %473 = dma.vmem_to_hbm [thread:$0]  %s471_s26, 256, %s820_s7, [#allocation4]  }
 0x2c0   :  { %735 = dma.done.wait [#allocation4], 256  }
 0x2c1   :  { %736 = vsyncadd [#allocation4], 4294967040 }
 0x2c2   :  { %477 = vsyncpa [#allocation3], 1 }
 0x2c3   :  { %478 = vsyncpa [#allocation6], 1 }
 0x2c4   :  { %479 = vsyncpa [#allocation9], 1 }
 0x2c5   :  { %480 = vsyncpa [#allocation4], 1 }

</bundles_post_ra>
